<compile_context>
chip_gen: v7x
topology: tpu7x:2x2x1
jax: 0.10.0
libtpu: 0.0.40
codegen_flags: <defaults>
</compile_context>

<pallas_src>
import jax
import jax.numpy as jnp
from jax import lax
from jax.experimental import pallas as pl
from jax.experimental.pallas import tpu as pltpu


def _round_up(x: int, m: int) -> int:
    return (x + m - 1) // m * m


def vd_linear_kernel(x_ref, w_ref, b_ref, la_ref, z_ref, o_ref, acc_ref):
    k = pl.program_id(2)

    @pl.when(k == 0)
    def _init():
        acc_ref[...] = jnp.zeros_like(acc_ref)

    # x_ref: (tm, tk), w_ref: (tn, tk) -> contract the shared K dim on the MXU.
    acc_ref[...] += lax.dot_general(
        x_ref[...],
        w_ref[...],
        dimension_numbers=(((1,), (1,)), ((), ())),
        preferred_element_type=jnp.float32,
    )

    @pl.when(k == pl.num_programs(2) - 1)
    def _finalize():
        out = acc_ref[...] + b_ref[...]                       # (tm, tn) + (1, tn)
        # exp(log_alpha) >= 0, so only the upper clip is needed.
        alpha = jnp.minimum(jnp.exp(la_ref[...]), jnp.float32(1.0))
        eps = 1.0 + jnp.sqrt(alpha) * z_ref[...]
        o_ref[...] = (eps * out).astype(o_ref.dtype)


def variational_dropout_linear(x, weight, bias, log_alpha, noise,
                               *, compute_dtype=jnp.bfloat16):
    """Forward pass of VariationalDropoutLinear.

    x:         (batch, in_features)
    weight:    (out_features, in_features)   -- NOT pre-transposed
    bias:      (out_features,)
    log_alpha: (1, out_features)
    noise:     (batch, out_features) standard-normal draws (= torch.randn_like(out))
    """
    M, K = x.shape
    N, K2 = weight.shape
    assert K == K2

    # Sublane multiple of the MXU input dtype (16 for bf16, 8 for f32).
    row_align = 16 if compute_dtype == jnp.bfloat16 else 8

    # Tile sizes sized for v7x's 64 MiB VMEM (also fine on v5e/v6e).
    tm = min(256, _round_up(M, row_align))
    tn = min(256, _round_up(N, 128))
    tk = min(512, _round_up(K, 128))

    Mp = _round_up(M, tm)
    Np = _round_up(N, tn)
    Kp = _round_up(K, tk)

    # Pad operands (zeros in the padded K region contribute nothing).
    xp = jnp.zeros((Mp, Kp), compute_dtype).at[:M, :K].set(x.astype(compute_dtype))
    wp = jnp.zeros((Np, Kp), compute_dtype).at[:N, :K].set(weight.astype(compute_dtype))
    bp = jnp.zeros((1, Np), jnp.float32).at[0, :N].set(
        bias.astype(jnp.float32).reshape(-1))
    lap = jnp.zeros((1, Np), jnp.float32).at[0, :N].set(
        log_alpha.astype(jnp.float32).reshape(-1))
    zp = jnp.zeros((Mp, Np), jnp.float32).at[:M, :N].set(noise.astype(jnp.float32))

    grid = (Mp // tm, Np // tn, Kp // tk)

    out = pl.pallas_call(
        vd_linear_kernel,
        out_shape=jax.ShapeDtypeStruct((Mp, Np), jnp.float32),
        grid=grid,
        in_specs=[
            pl.BlockSpec((tm, tk), lambda i, j, k: (i, k)),   # x
            pl.BlockSpec((tn, tk), lambda i, j, k: (j, k)),   # weight (out, in)
            pl.BlockSpec((1, tn), lambda i, j, k: (0, j)),    # bias
            pl.BlockSpec((1, tn), lambda i, j, k: (0, j)),    # log_alpha
            pl.BlockSpec((tm, tn), lambda i, j, k: (i, j)),   # noise
        ],
        out_specs=pl.BlockSpec((tm, tn), lambda i, j, k: (i, j)),
        scratch_shapes=[pltpu.VMEM((tm, tn), jnp.float32)],
        compiler_params=pltpu.CompilerParams(
            dimension_semantics=("parallel", "parallel", "arbitrary"),
            vmem_limit_bytes=48 * 1024 * 1024,
        ),
    )(xp, wp, bp, lap, zp)

    return out[:M, :N]


if __name__ == "__main__":
    batch, in_features, out_features = 8, 32, 32
    alpha_init = 0.1

    key = jax.random.PRNGKey(0)
    kx, kw, kb, kz = jax.random.split(key, 4)

    # Parameter init mirroring the PyTorch module:
    #   kaiming_normal_(weight) -> N(0, sqrt(2 / fan_in))
    #   nn.Linear default bias  -> U(-1/sqrt(fan_in), 1/sqrt(fan_in))
    #   log_alpha = log(alpha_init) * ones(1, out_features)
    weight = jax.random.normal(kw, (out_features, in_features), jnp.float32) * jnp.sqrt(
        2.0 / in_features)
    bound = 1.0 / (in_features ** 0.5)
    bias = jax.random.uniform(kb, (out_features,), jnp.float32, -bound, bound)
    log_alpha = jnp.log(jnp.float32(alpha_init)) * jnp.ones(
        (1, out_features), jnp.float32)

    x = jax.random.normal(kx, (batch, in_features), jnp.float32)
    noise = jax.random.normal(kz, (batch, out_features), jnp.float32)  # randn_like(out)

    y = variational_dropout_linear(x, weight, bias, log_alpha, noise)
    jax.block_until_ready(y)

    # Pure-JAX reference with the same explicit noise (bf16-rounded matmul
    # operands to match the kernel's MXU precision).
    xb = x.astype(jnp.bfloat16).astype(jnp.float32)
    wb = weight.astype(jnp.bfloat16).astype(jnp.float32)
    alpha_ref = jnp.clip(jnp.exp(log_alpha), 0.0, 1.0)
    out_ref = xb @ wb.T + bias
    y_ref = (1.0 + jnp.sqrt(alpha_ref) * noise) * out_ref

    assert y.shape == (batch, out_features) and y.dtype == jnp.float32
    assert bool(jnp.all(jnp.isfinite(y)))
    assert bool(jnp.allclose(y, y_ref, rtol=1e-2, atol=1e-2)), (
        f"max abs err {float(jnp.max(jnp.abs(y - y_ref)))}")
    print("KERNEL_OK")
</pallas_src>

<mosaic_0001>
module attributes {stable_mosaic.version = 11 : i64} {
  func.func @vd_linear_kernel(%arg0: i32, %arg1: i32, %arg2: i32, %arg3: memref<16x128xbf16, #tpu.memory_space<vmem>>, %arg4: memref<128x128xbf16, #tpu.memory_space<vmem>>, %arg5: memref<1x128xf32, #tpu.memory_space<vmem>>, %arg6: memref<1x128xf32, #tpu.memory_space<vmem>>, %arg7: memref<16x128xf32, #tpu.memory_space<vmem>>, %arg8: memref<16x128xf32, #tpu.memory_space<vmem>>, %arg9: memref<16x128xf32, #tpu.memory_space<vmem>>) attributes {dimension_semantics = [#tpu.dimension_semantics<parallel>, #tpu.dimension_semantics<parallel>, #tpu.dimension_semantics<arbitrary>], iteration_bounds = array<i64: 1, 1, 1>, scalar_prefetch = 0 : i64, scratch_operands = 1 : i64, tpu.core_type = #tpu.core_type<tc>, window_params = [{transform_indices = @transform_0, window_bounds = array<i64: 16, 128>}, {transform_indices = @transform_1, window_bounds = array<i64: 128, 128>}, {transform_indices = @transform_2, window_bounds = array<i64: 1, 128>}, {transform_indices = @transform_3, window_bounds = array<i64: 1, 128>}, {transform_indices = @transform_4, window_bounds = array<i64: 16, 128>}, {transform_indices = @transform_5, window_bounds = array<i64: 16, 128>}]} {
    %c0_i32 = arith.constant 0 : i32
    %0 = arith.cmpi eq, %arg2, %c0_i32 : i32
    %1 = arith.extui %0 : i1 to i32
    %c0_i32_0 = arith.constant 0 : i32
    %2 = arith.cmpi ne, %1, %c0_i32_0 : i32
    scf.if %2 {
      %cst_10 = arith.constant 0.000000e+00 : f32
      %12 = vector.broadcast %cst_10 : f32 to vector<16x128xf32>
      %c0_11 = arith.constant 0 : index
      %c0_12 = arith.constant 0 : index
      %13 = vector.load %arg9[%c0_11, %c0_12] : memref<16x128xf32, #tpu.memory_space<vmem>>, vector<16x128xf32>
      tpu.vector_store %arg9[%c0_11, %c0_12], %12 {strides = array<i32>} : memref<16x128xf32, #tpu.memory_space<vmem>>, vector<16x128xf32>,
    } else {
    }
    %c0 = arith.constant 0 : index
    %c0_1 = arith.constant 0 : index
    %3 = vector.load %arg9[%c0, %c0_1] : memref<16x128xf32, #tpu.memory_space<vmem>>, vector<16x128xf32>
    %c0_2 = arith.constant 0 : index
    %c0_3 = arith.constant 0 : index
    %4 = vector.load %arg3[%c0_2, %c0_3] : memref<16x128xbf16, #tpu.memory_space<vmem>>, vector<16x128xbf16>
    %c0_4 = arith.constant 0 : index
    %c0_5 = arith.constant 0 : index
    %5 = vector.load %arg4[%c0_4, %c0_5] : memref<128x128xbf16, #tpu.memory_space<vmem>>, vector<128x128xbf16>
    %cst = arith.constant dense<0.000000e+00> : vector<16x128xf32>
    %6 = tpu.matmul %4, %5, %cst {dimension_numbers = #tpu.dot_dimension_numbers<[1], [1], [0], [0], [0, 0, 1, 0], [], []>} : vector<16x128xbf16>, vector<128x128xbf16>, vector<16x128xf32> -> vector<16x128xf32>
    %7 = arith.addf %3, %6 : vector<16x128xf32>
    %c0_6 = arith.constant 0 : index
    %c0_7 = arith.constant 0 : index
    %8 = vector.load %arg9[%c0_6, %c0_7] : memref<16x128xf32, #tpu.memory_space<vmem>>, vector<16x128xf32>
    tpu.vector_store %arg9[%c0_6, %c0_7], %7 {strides = array<i32>} : memref<16x128xf32, #tpu.memory_space<vmem>>, vector<16x128xf32>,
    %c0_i32_8 = arith.constant 0 : i32
    %9 = arith.cmpi eq, %arg2, %c0_i32_8 : i32
    %10 = arith.extui %9 : i1 to i32
    %c0_i32_9 = arith.constant 0 : i32
    %11 = arith.cmpi ne, %10, %c0_i32_9 : i32
    scf.if %11 {
      %c0_10 = arith.constant 0 : index
      %c0_11 = arith.constant 0 : index
      %12 = vector.load %arg9[%c0_10, %c0_11] : memref<16x128xf32, #tpu.memory_space<vmem>>, vector<16x128xf32>
      %c0_12 = arith.constant 0 : index
      %c0_13 = arith.constant 0 : index
      %13 = vector.load %arg5[%c0_12, %c0_13] : memref<1x128xf32, #tpu.memory_space<vmem>>, vector<1x128xf32>
      %14 = vector.broadcast %13 : vector<1x128xf32> to vector<16x128xf32>
      %15 = arith.addf %12, %14 : vector<16x128xf32>
      %c0_14 = arith.constant 0 : index
      %c0_15 = arith.constant 0 : index
      %16 = vector.load %arg6[%c0_14, %c0_15] : memref<1x128xf32, #tpu.memory_space<vmem>>, vector<1x128xf32>
      %17 = math.exp %16 : vector<1x128xf32>
      %cst_16 = arith.constant 1.000000e+00 : f32
      %18 = vector.broadcast %cst_16 : f32 to vector<1x128xf32>
      %19 = arith.minimumf %17, %18 : vector<1x128xf32>
      %20 = math.sqrt %19 : vector<1x128xf32>
      %c0_17 = arith.constant 0 : index
      %c0_18 = arith.constant 0 : index
      %21 = vector.load %arg7[%c0_17, %c0_18] : memref<16x128xf32, #tpu.memory_space<vmem>>, vector<16x128xf32>
      %22 = vector.broadcast %20 : vector<1x128xf32> to vector<16x128xf32>
      %23 = arith.mulf %22, %21 : vector<16x128xf32>
      %cst_19 = arith.constant 1.000000e+00 : f32
      %24 = vector.broadcast %cst_19 : f32 to vector<16x128xf32>
      %25 = arith.addf %24, %23 : vector<16x128xf32>
      %26 = arith.mulf %25, %15 : vector<16x128xf32>
      %c0_20 = arith.constant 0 : index
      %c0_21 = arith.constant 0 : index
      %27 = vector.load %arg8[%c0_20, %c0_21] : memref<16x128xf32, #tpu.memory_space<vmem>>, vector<16x128xf32>
      tpu.vector_store %arg8[%c0_20, %c0_21], %26 {strides = array<i32>} : memref<16x128xf32, #tpu.memory_space<vmem>>, vector<16x128xf32>,
    } else {
    }
    return
  }
  func.func @transform_0(%arg0: i32, %arg1: i32, %arg2: i32) -> (i32, i32) {
    %c0_i32 = arith.constant 0 : i32
    return %arg0, %arg2 : i32, i32
  }
  func.func @transform_1(%arg0: i32, %arg1: i32, %arg2: i32) -> (i32, i32) {
    %c0_i32 = arith.constant 0 : i32
    return %arg1, %arg2 : i32, i32
  }
  func.func @transform_2(%arg0: i32, %arg1: i32, %arg2: i32) -> (i32, i32) {
    %c0_i32 = arith.constant 0 : i32
    %c0_i32_0 = arith.constant 0 : i32
    return %c0_i32, %arg1 : i32, i32
  }
  func.func @transform_3(%arg0: i32, %arg1: i32, %arg2: i32) -> (i32, i32) {
    %c0_i32 = arith.constant 0 : i32
    %c0_i32_0 = arith.constant 0 : i32
    return %c0_i32, %arg1 : i32, i32
  }
  func.func @transform_4(%arg0: i32, %arg1: i32, %arg2: i32) -> (i32, i32) {
    %c0_i32 = arith.constant 0 : i32
    return %arg0, %arg1 : i32, i32
  }
  func.func @transform_5(%arg0: i32, %arg1: i32, %arg2: i32) -> (i32, i32) {
    %c0_i32 = arith.constant 0 : i32
    return %arg0, %arg1 : i32, i32
  }
}

</mosaic_0001>

<bundles_post_ra>
// kernel: tpu_custom_call.1
= control target key start
LH: loop header
LB: loop body
LE: loop exit
PB: predicated region body
PF: predicated region fallthrough
CT: control target
= control target key end

     0   :  { %10 = vsyncpa [#allocation4], 0  ;;  %s510_s0 = inlined_call_operand.hbm [shape: bf16[16,128], index: 0, kind: input, shape index: {}]   ;;  %s511_s1 = inlined_call_operand.hbm [shape: bf16[128,128], index: 1, kind: input, shape index: {}]   ;;  %s512_s2 = inlined_call_operand.vmem [shape: f32[1,128], index: 2, kind: input, shape index: {}]   ;;  %s513_s3 = inlined_call_operand.vmem [shape: f32[1,128], index: 3, kind: input, shape index: {}]   ;;  %s514_s4 = inlined_call_operand.hbm [shape: f32[16,128], index: 4, kind: input, shape index: {}]   ;;  %s515_s5 = inlined_call_operand.hbm [shape: f32[16,128], index: 5, kind: output, shape index: {}]  }
   0x1   :  { %11 = vsyncpa [#allocation7], 0 }
   0x2   :  { %12 = vsyncpa [#allocation5], 0  ;;  %s403_s18 = smov [#allocation6]   ;;  %s404_s20 = smov [#allocation3]  }
   0x3   :  { %s30_s19 = sshll.u32 %s403_s18, 4  ;;  %s18_s21 = sshll.u32 %s404_s20, 4  ;;  %s31_s19 = int_to_ptr.vmem [resolvable:$true] %s30_s19  ;;  %s443_s21 = int_to_ptr.vmem [resolvable:$true] %s18_s21 }
   0x4   :  { %s309_s24 = scalar_lea.hbm %s511_s1, 1024 }
   0x5   :  { %p310_p0 = scmp.ne.s32.totalorder %s511_s1, %s309_s24  ;;  %p313_p1 = scmp.lt.u32.totalorder %s309_s24, %s511_s1 }
   0x7   :  { %p315_p2 = pnand %p313_p1, %p310_p0 }
   0x9   :  { %318 = shalt.err (!%p315_p2)
}
   0xa   :  { %s319_s29 = scalar_lea.vmem %s31_s19, 1024  ;;  %p324_p4 = scmp.lt.s32.totalorder %s31_s19, %s31_s19 }
   0xb   :  { %p320_p3 = scmp.ne.s32.totalorder %s31_s19, %s319_s29  ;;  %p325_p5 = scmp.lt.s32.totalorder %s319_s29, %s319_s29 }
   0xd   :  { %p326_p6 = por %p325_p5, %p324_p4 }
   0xf   :  { %p327_p7 = pnand %p326_p6, %p320_p3 }
  0x11   :  { %330 = shalt.err (!%p327_p7)
}
  0x12   :  { %s405_s30 = smov 64   ;;  %s406_s6 = smov 4  }
  0x13   :  { %36 = dma.hbm_to_vmem [thread:$0]  %s511_s1, 1024, %s31_s19, [#allocation7], %s405_s30, %s405_s30, %s406_s6  }
  0x14   :  { %s331_s11 = scalar_lea.hbm %s510_s0, 128 }
  0x15   :  { %p332_p8 = scmp.ne.s32.totalorder %s510_s0, %s331_s11  ;;  %p335_p9 = scmp.lt.u32.totalorder %s331_s11, %s510_s0 }
  0x17   :  { %p337_p10 = pnand %p335_p9, %p332_p8 }
  0x19   :  { %340 = shalt.err (!%p337_p10)
}
  0x1a   :  { %s341_s16 = scalar_lea.vmem %s443_s21, 128  ;;  %p346_p12 = scmp.lt.s32.totalorder %s443_s21, %s443_s21 }
  0x1b   :  { %p342_p11 = scmp.ne.s32.totalorder %s443_s21, %s341_s16  ;;  %p347_p13 = scmp.lt.s32.totalorder %s341_s16, %s341_s16 }
  0x1d   :  { %p348_p0 = por %p347_p13, %p346_p12 }
  0x1f   :  { %p349_p1 = pnand %p348_p0, %p342_p11 }
  0x21   :  { %352 = shalt.err (!%p349_p1)
}
  0x22   :  { %24 = dma.hbm_to_vmem [thread:$0]  %s510_s0, 128, %s443_s21, [#allocation4], %s405_s30, %s405_s30, %s406_s6  }
  0x23   :  { %s407_s18 = smov [#allocation8]   ;;  %s353_s23 = scalar_lea.hbm %s514_s4, 256 }
  0x24   :  { %s46_s19 = sshll.u32 %s407_s18, 4  ;;  %p354_p2 = scmp.ne.s32.totalorder %s514_s4, %s353_s23  ;;  %s47_s19 = int_to_ptr.vmem [resolvable:$true] %s46_s19 }
  0x25   :  { %p357_p3 = scmp.lt.u32.totalorder %s353_s23, %s514_s4 }
  0x27   :  { %p359_p4 = pnand %p357_p3, %p354_p2 }
  0x29   :  { %362 = shalt.err (!%p359_p4)
}
  0x2a   :  { %s363_s28 = scalar_lea.vmem %s47_s19, 256  ;;  %p368_p6 = scmp.lt.s32.totalorder %s47_s19, %s47_s19 }
  0x2b   :  { %p364_p5 = scmp.ne.s32.totalorder %s47_s19, %s363_s28  ;;  %p369_p7 = scmp.lt.s32.totalorder %s363_s28, %s363_s28 }
  0x2d   :  { %p370_p8 = por %p369_p7, %p368_p6 }
  0x2f   :  { %p371_p9 = pnand %p370_p8, %p364_p5 }
  0x31   :  { %374 = shalt.err (!%p371_p9)
}
  0x32   :  { %s408_s0 = smov 128   ;;  %s409_s21 = smov 8  }
  0x33   :  { %52 = dma.hbm_to_vmem [thread:$0]  %s514_s4, 256, %s47_s19, [#allocation7], %s408_s0, %s408_s0, %s409_s21  }
  0x34   :  { %397 = dma.done.wait [#allocation4], 128  }
  0x35   :  { %398 = vsyncadd [#allocation4], 4294967168 }
  0x36   :  { %399 = dma.done.wait [#allocation7], 1280  }
  0x37   :  { %400 = vsyncadd [#allocation7], 4294966016  ;;  %v410_v0 = vmov 0.0   ;;  %vm411_vm0 = vmmov 0   ;;  %v296_v1 = vld [vmem:[#allocation6] sm:$0xff]   ;;  %v297_v2 = vld [vmem:[#allocation6 + $0x8] sm:$0xff]   ;;  %v216_v15 = vlaneseq }
  0x38   :  { %266 = vmatprep.subr.bf16.mxu0 %v410_v0  ;;  %282 = vmatprep.mubr.msk.bf16.mxu0 %vm411_vm0, %v410_v0  ;;  %v298_v3 = vld [vmem:[#allocation6 + $0x10] sm:$0xff]   ;;  %v299_v4 = vld [vmem:[#allocation6 + $0x18] sm:$0xff]   ;;  %v300_v5 = vld [vmem:[#allocation6 + $0x20] sm:$0xff]   ;;  %s412_s8 = smov [#allocation9]  }
  0x39   :  { %267 = vmatpush3.bf16.xpose.msra.mxu0 %v296_v1  ;;  %v301_v6 = vld [vmem:[#allocation6 + $0x28] sm:$0xff]   ;;  %v302_v7 = vld [vmem:[#allocation6 + $0x30] sm:$0xff]   ;;  %v303_v8 = vld [vmem:[#allocation6 + $0x38] sm:$0xff]   ;;  %v217_v17 = vshrl.u32 %v216_v15, 7  ;;  %s234_s9 = sshll.u32 %s412_s8, 4  ;;  %s235_s9 = int_to_ptr.vmem [resolvable:$true] %s234_s9 }
  0x3a   :  { %268 = vmatprep.subr.bf16.mxu0 %v410_v0  ;;  %v304_v9 = vld [vmem:[#allocation3] sm:$0xff]   ;;  %v213_v23 = vld [vmem:[#allocation8] sm:$0xff]  ;;  %v214_v24 = vld [vmem:[#allocation8 + $0x8] sm:$0xff]  ;;  %s375_s10 = scalar_lea.vmem %s235_s9, 256  ;;  %p380_p11 = scmp.lt.s32.totalorder %s235_s9, %s235_s9 }
  0x3b   :  { %v202_v10 = vld [vmem:[%s513_s3] sm:$0x1]  ;;  %v218_v20 = vsub.s32 0, %v217_v17  ;;  %p376_p10 = scmp.ne.s32.totalorder %s235_s9, %s375_s10  ;;  %p381_p12 = scmp.lt.s32.totalorder %s375_s10, %s375_s10 }
  0x3c   :  { %v203_v11 = vmul.f32 1.442695, %v202_v10  ;;  %v256_v27 = vld [vmem:[%s512_s2] ss:$0 sm:$0xff] }
  0x3d   :  { %p382_p13 = por %p381_p12, %p380_p11 }
  0x3e   :  { %305 = vpow2.f32 %v203_v11 }
  0x3f   :  { %p383_p0 = pnand %p382_p13, %p376_p10 }
  0x41   :  { %269 = vmatpush3.bf16.xpose.msra.mxu0 %v297_v2 }
  0x42   :  { %270 = vmatprep.subr.bf16.mxu0 %v410_v0 }
  0x48   :  { %v306_v12 = vpop.eup %305 }
  0x49   :  { %271 = vmatpush3.bf16.xpose.msra.mxu0 %v298_v3  ;;  %v205_v13 = vmin.f32 %v306_v12, 1.0 }
  0x4a   :  { %272 = vmatprep.subr.bf16.mxu0 %v410_v0 }
  0x4b   :  { %307 = vrsqrt.f32 %v205_v13  ;;  %vm208_vm1 = vcmp.eq.f32.partialorder %v205_v13, inf  ;;  %v211_v18 = vand.u32 2147483648, %v205_v13  ;;  %vm210_vm2 = vcmp.eq.f32.partialorder %v205_v13, 0.0 }
  0x51   :  { %273 = vmatpush3.bf16.xpose.msra.mxu0 %v299_v4 }
  0x52   :  { %274 = vmatprep.subr.bf16.mxu0 %v410_v0 }
  0x55   :  { %v308_v14 = vpop.eup %307 }
  0x56   :  { %v207_v16 = vmul.f32 %v308_v14, %v205_v13 }
  0x58   :  { %v209_v19 = vsel %vm208_vm1, %v205_v13, %v207_v16 }
  0x59   :  { %275 = vmatpush3.bf16.xpose.msra.mxu0 %v300_v5  ;;  %v212_v21 = vsel %vm210_vm2, %v211_v18, %v209_v19 }
  0x5a   :  { %276 = vmatprep.subr.bf16.mxu0 %v410_v0  ;;  %v219_v22 = vrot.slane %v212_v21, %v218_v20 }
  0x5c   :  { %v221_v25 = vmul.f32 %v219_v22, %v213_v23  ;;  %v222_v26 = vmul.f32 %v219_v22, %v214_v24 }
  0x5e   :  { %v223_v28 = vadd.f32 1.0, %v221_v25  ;;  %v224_v32 = vadd.f32 1.0, %v222_v26 }
  0x61   :  { %277 = vmatpush3.bf16.xpose.msra.mxu0 %v301_v6 }
  0x62   :  { %278 = vmatprep.subr.bf16.mxu0 %v410_v0 }
  0x69   :  { %279 = vmatpush3.bf16.xpose.msra.mxu0 %v302_v7 }
  0x6a   :  { %280 = vmatprep.subr.bf16.mxu0 %v410_v0 }
  0x71   :  { %281 = vmatpush3.bf16.xpose.msra.mxu0 %v303_v8 }
  0x78   :  { %283 = vmatmul.mubr.bf16.vlgmr.msra.gmra.mrb[0].mxu0 %v304_v9 }
 0x14b   :  { %v177_v29 = vpop.f32.mrb[0].mxu0 }
 0x14c   :  { %v200_v30 = vadd.f32 %v256_v27, %v177_v29  ;;  %v284_v31 = vpop.f32.mrb[1].mxu0 }
 0x14d   :  { %v180_v33 = vpop.f32.mrb[2].mxu0 }
 0x14e   :  { %v225_v34 = vmul.f32 %v223_v28, %v200_v30  ;;  %v201_v35 = vadd.f32 %v256_v27, %v180_v33  ;;  %v285_v36 = vpop.f32.mrb[3].mxu0 }
 0x150   :  { %227 = vst [vmem:[#allocation9] sm:$0xff] %v225_v34  ;;  %v226_v37 = vmul.f32 %v224_v32, %v201_v35 }
 0x152   :  { %228 = vst [vmem:[#allocation9 + $0x8] sm:$0xff] %v226_v37 }
 0x153   :  { %386 = shalt.err (!%p383_p0)
}
 0x154   :  { %s387_s12 = scalar_lea.hbm %s515_s5, 256 }
 0x155   :  { %p388_p1 = scmp.ne.s32.totalorder %s515_s5, %s387_s12  ;;  %p391_p2 = scmp.lt.u32.totalorder %s387_s12, %s515_s5 }
 0x157   :  { %p393_p3 = pnand %p391_p2, %p388_p1 }
 0x159   :  { %396 = shalt.err (!%p393_p3)
}
 0x15a   :  { %240 = dma.vmem_to_hbm [thread:$0]  %s235_s9, 256, %s515_s5, [#allocation5], %s408_s0, %s408_s0, %s409_s21  }
 0x15b   :  { %401 = dma.done.wait [#allocation5], 256  }
 0x15c   :  { %402 = vsyncadd [#allocation5], 4294967040 }
 0x15d   :  { %244 = vsyncpa [#allocation4], 1 }
 0x15e   :  { %245 = vsyncpa [#allocation7], 1 }
 0x15f   :  { %246 = vsyncpa [#allocation5], 1 }

</bundles_post_ra>
